<compile_context>
chip_gen: v7x
topology: tpu7x:2x2x1
jax: 0.10.0
libtpu: 0.0.40
codegen_flags: <defaults>
</compile_context>

<pallas_src>
import functools

import jax
import jax.numpy as jnp
from jax.experimental import pallas as pl
from jax.experimental.pallas import tpu as pltpu

_NEG_BIG = -1e30       # logit value for padded vocab columns -> ~zero softmax mass
_LANE = 128
_SUBLANE_BF16 = 16     # bf16 packs two sublanes; keep M tiles 16-aligned


def _round_up(x, m):
    return (x + m - 1) // m * m


# --------------------------------------------------------------------------- #
# Kernels
# --------------------------------------------------------------------------- #
def _fused_kernel(x_ref, w_ref, b_ref, o_ref):
    """Single-pass path (whole padded vocab is one lane tile)."""
    logits = jnp.dot(x_ref[...], w_ref[...],
                     preferred_element_type=jnp.float32) + b_ref[...]
    m = jnp.max(logits, axis=-1, keepdims=True)
    l = jnp.sum(jnp.exp(logits - m), axis=-1, keepdims=True)
    lse = m + jnp.log(l)
    o_ref[...] = (logits - lse).astype(o_ref.dtype)


def _logits_lse_kernel(x_ref, w_ref, b_ref, logits_ref, lse_ref, m_sc, l_sc):
    """Spill path, pass 1: stream W once per M tile, spill f32 logits to HBM and
    accumulate online-softmax stats; emit lse at the last vocab tile."""
    v = pl.program_id(1)
    logits = jnp.dot(x_ref[...], w_ref[...],
                     preferred_element_type=jnp.float32) + b_ref[...]

    @pl.when(v == 0)
    def _init():
        m_sc[...] = jnp.full_like(m_sc, -jnp.inf)
        l_sc[...] = jnp.zeros_like(l_sc)

    m_prev = m_sc[...]
    m_new = jnp.maximum(m_prev, jnp.max(logits, axis=-1, keepdims=True))
    l_sc[...] = (l_sc[...] * jnp.exp(m_prev - m_new)
                 + jnp.sum(jnp.exp(logits - m_new), axis=-1, keepdims=True))
    m_sc[...] = m_new
    logits_ref[...] = logits.astype(logits_ref.dtype)

    @pl.when(v == pl.num_programs(1) - 1)
    def _emit_lse():
        lse_ref[...] = m_sc[...] + jnp.log(l_sc[...])


def _sub_lse_kernel(logits_ref, lse_ref, o_ref):
    """Spill path, pass 2: pure elementwise logits - lse."""
    o_ref[...] = (logits_ref[...] - lse_ref[...]).astype(o_ref.dtype)


# --------------------------------------------------------------------------- #
# Tiling / device heuristics
# --------------------------------------------------------------------------- #
def _device_info():
    kind = ""
    vmem_bytes = 64 * 1024 * 1024        # conservative fallback (v7x per-core)
    try:
        kind = jax.devices()[0].device_kind
    except Exception:
        pass
    try:
        vmem_bytes = int(pltpu.get_tpu_info().vmem_capacity_bytes)
    except Exception:
        pass
    return kind, vmem_bytes


def _target_tile_m(kind):
    k = kind.lower()
    if "v6" in k:
        return 1024      # v6e weight-stream roofline crossover ~650 FLOP/B
    if "v7" in k:
        return 512       # v7x ~310 FLOP/B per TC, smaller (64 MiB) VMEM
    if "v5" in k:
        return 512       # v5e ~240 FLOP/B
    return 512


def _pick_tile_v(d_model, vocab, vmem_budget):
    tv = min(2048, _round_up(vocab, _LANE))
    tv = max(_LANE, _round_up(tv, _LANE))
    # Keep the double-buffered bf16 weight tile under ~40% of the VMEM budget.
    while tv > _LANE and 2 * d_model * tv * 2 > 0.4 * vmem_budget:
        tv = max(_LANE, _round_up(tv // 2, _LANE))
    return tv


def _vmem_est_fused(tile_m, v_pad, d_model, out_bytes):
    return (2 * tile_m * d_model * 2           # x tile (bf16, double-buffered)
            + 2 * d_model * v_pad * 2          # full weight (bf16)
            + 2 * 8 * v_pad * 4                # bias (f32, sublane-padded)
            + 2 * tile_m * v_pad * out_bytes   # output tile
            + 3 * tile_m * v_pad * 4)          # in-kernel f32 logits/exp temps


def _vmem_est_spill(tile_m, tile_v, d_model):
    return (2 * tile_m * d_model * 2           # x tile (bf16)
            + 2 * d_model * tile_v * 2         # weight tile (bf16)
            + 2 * 8 * tile_v * 4               # bias tile
            + 2 * tile_m * tile_v * 4          # f32 logits output tile
            + 4 * tile_m * _LANE * 4           # lse output + m/l scratch (lane-padded)
            + 2 * tile_m * tile_v * 4)         # in-kernel temporaries


# --------------------------------------------------------------------------- #
# Forward (jitted; all tile sizes static)
# --------------------------------------------------------------------------- #
@functools.partial(
    jax.jit,
    static_argnames=("vocab", "tile_m", "tile_v", "out_dtype", "vmem_limit"))
def _forward_impl(x2, w_t, b2d, *, vocab, tile_m, tile_v, out_dtype, vmem_limit):
    m_rows, d_model = x2.shape
    v_pad = w_t.shape[1]
    m_pad = _round_up(m_rows, tile_m)

    x_p = x2.astype(jnp.bfloat16)
    if m_pad != m_rows:
        x_p = jnp.pad(x_p, ((0, m_pad - m_rows), (0, 0)))

    grid_m = m_pad // tile_m
    grid_v = v_pad // tile_v
    out_bytes = jnp.dtype(out_dtype).itemsize

    if grid_v == 1:
        # ----- single-pass fused path (small vocab heads) -----
        cost = pl.CostEstimate(
            flops=int(2 * m_pad * d_model * v_pad),
            transcendentals=int(m_pad * v_pad + m_pad),
            bytes_accessed=int(m_pad * d_model * 2 + d_model * v_pad * 2
                               + v_pad * 4 + m_pad * v_pad * out_bytes))
        out = pl.pallas_call(
            _fused_kernel,
            out_shape=jax.ShapeDtypeStruct((m_pad, v_pad), out_dtype),
            grid_spec=pltpu.PrefetchScalarGridSpec(
                num_scalar_prefetch=0,
                grid=(grid_m,),
                in_specs=[
                    pl.BlockSpec((tile_m, d_model), lambda i: (i, 0)),
                    pl.BlockSpec((d_model, v_pad), lambda i: (0, 0)),
                    pl.BlockSpec((1, v_pad), lambda i: (0, 0)),
                ],
                out_specs=pl.BlockSpec((tile_m, v_pad), lambda i: (i, 0)),
            ),
            compiler_params=pltpu.CompilerParams(
                dimension_semantics=("parallel",),
                vmem_limit_bytes=vmem_limit),
            cost_estimate=cost,
        )(x_p, w_t, b2d)
    else:
        # ----- spill path: one W sweep producing f32 logits + lse -----
        cost1 = pl.CostEstimate(
            flops=int(2 * m_pad * d_model * v_pad),
            transcendentals=int(m_pad * v_pad + m_pad),
            bytes_accessed=int(m_pad * d_model * 2
                               + grid_m * d_model * v_pad * 2
                               + grid_m * v_pad * 4
                               + m_pad * v_pad * 4 + m_pad * 4))
        logits, lse = pl.pallas_call(
            _logits_lse_kernel,
            out_shape=(jax.ShapeDtypeStruct((m_pad, v_pad), jnp.float32),
                       jax.ShapeDtypeStruct((m_pad, 1), jnp.float32)),
            grid_spec=pltpu.PrefetchScalarGridSpec(
                num_scalar_prefetch=0,
                grid=(grid_m, grid_v),
                in_specs=[
                    pl.BlockSpec((tile_m, d_model), lambda i, v: (i, 0)),
                    pl.BlockSpec((d_model, tile_v), lambda i, v: (0, v)),
                    pl.BlockSpec((1, tile_v), lambda i, v: (0, v)),
                ],
                out_specs=[
                    pl.BlockSpec((tile_m, tile_v), lambda i, v: (i, v)),
                    pl.BlockSpec((tile_m, 1), lambda i, v: (i, 0)),
                ],
                scratch_shapes=[pltpu.VMEM((tile_m, 1), jnp.float32),
                                pltpu.VMEM((tile_m, 1), jnp.float32)],
            ),
            compiler_params=pltpu.CompilerParams(
                dimension_semantics=("parallel", "arbitrary"),
                vmem_limit_bytes=vmem_limit),
            cost_estimate=cost1,
        )(x_p, w_t, b2d)

        cost2 = pl.CostEstimate(
            flops=int(m_pad * v_pad),
            transcendentals=0,
            bytes_accessed=int(m_pad * v_pad * (4 + out_bytes) + m_pad * 4))
        out = pl.pallas_call(
            _sub_lse_kernel,
            out_shape=jax.ShapeDtypeStruct((m_pad, v_pad), out_dtype),
            grid_spec=pltpu.PrefetchScalarGridSpec(
                num_scalar_prefetch=0,
                grid=(grid_m, grid_v),
                in_specs=[
                    pl.BlockSpec((tile_m, tile_v), lambda i, v: (i, v)),
                    pl.BlockSpec((tile_m, 1), lambda i, v: (i, 0)),
                ],
                out_specs=pl.BlockSpec((tile_m, tile_v), lambda i, v: (i, v)),
            ),
            compiler_params=pltpu.CompilerParams(
                dimension_semantics=("parallel", "parallel"),
                vmem_limit_bytes=vmem_limit),
            cost_estimate=cost2,
        )(logits, lse)

    return out[:m_rows, :vocab]


# --------------------------------------------------------------------------- #
# Module-style wrapper (hoists all weight prep out of the hot path)
# --------------------------------------------------------------------------- #
class PallasGenerator:
    """forward(x) = log_softmax(x @ weight.T + bias, axis=-1)."""

    def __init__(self, weight, bias, *, out_dtype=jnp.bfloat16,
                 tile_m=None, tile_v=None):
        vocab, d_model = weight.shape
        assert bias.shape == (vocab,)
        self.vocab = int(vocab)
        self.d_model = int(d_model)
        self.out_dtype = out_dtype

        kind, vmem_bytes = _device_info()
        self._vmem_bytes = vmem_bytes
        self._vmem_budget = int(0.7 * vmem_bytes)
        self._two_core = "v7" in kind.lower()
        self._target_tm = int(tile_m) if tile_m is not None else _target_tile_m(kind)

        if tile_v is None:
            tile_v = _pick_tile_v(d_model, vocab, self._vmem_budget)
        tile_v = max(_LANE, _round_up(int(tile_v), _LANE))
        tile_v = min(tile_v, _round_up(vocab, _LANE))
        v_pad = _round_up(_round_up(vocab, _LANE), tile_v)
        self.tile_v = tile_v
        self.v_pad = v_pad

        # One-time weight prep: transpose -> bf16 -> vocab pad (HBM resident).
        w_t = jnp.asarray(weight).T.astype(jnp.bfloat16)     # (d_model, vocab)
        b2d = jnp.asarray(bias, jnp.float32)[None, :]        # (1, vocab)
        if v_pad != vocab:
            w_t = jnp.pad(w_t, ((0, 0), (0, v_pad - vocab)))
            b2d = jnp.pad(b2d, ((0, 0), (0, v_pad - vocab)),
                          constant_values=_NEG_BIG)
        self.w_t = w_t
        self.b2d = b2d

    def _pick_tile_m(self, m_rows):
        m_cap = _round_up(m_rows, _SUBLANE_BF16)
        tm = min(_round_up(self._target_tm, _SUBLANE_BF16), m_cap)
        # v7x: ensure the "parallel" M axis has >= 2 tiles so both TCs get work.
        if (self._two_core and m_cap >= 2 * _SUBLANE_BF16
                and _round_up(m_rows, tm) // tm < 2):
            tm = _round_up(-(-m_cap // 2), _SUBLANE_BF16)

        grid_v = self.v_pad // self.tile_v
        out_bytes = jnp.dtype(self.out_dtype).itemsize

        def est(t):
            if grid_v == 1:
                return _vmem_est_fused(t, self.v_pad, self.d_model, out_bytes)
            return _vmem_est_spill(t, self.tile_v, self.d_model)

        while tm > _SUBLANE_BF16 and est(tm) > self._vmem_budget:
            tm = max(_SUBLANE_BF16, _round_up(tm // 2, _SUBLANE_BF16))
        return tm, est(tm)

    def __call__(self, x):
        *lead, d_model = x.shape
        assert d_model == self.d_model
        x2 = x.reshape(-1, d_model)
        m_rows = x2.shape[0]
        tile_m, est = self._pick_tile_m(m_rows)
        vmem_limit = int(min(0.92 * self._vmem_bytes,
                             max(32 * 1024 * 1024, 1.5 * est)))
        out = _forward_impl(x2, self.w_t, self.b2d,
                            vocab=self.vocab, tile_m=tile_m, tile_v=self.tile_v,
                            out_dtype=self.out_dtype, vmem_limit=vmem_limit)
        return out.reshape(*lead, self.vocab)


def _reference(x, weight, bias):
    # Reference with the same bf16 operand quantization, f32 accumulation.
    xb = x.astype(jnp.bfloat16).astype(jnp.float32)
    wb = weight.astype(jnp.bfloat16).astype(jnp.float32)
    logits = jnp.einsum("...d,vd->...v", xb, wb) + bias.astype(jnp.float32)
    return jax.nn.log_softmax(logits, axis=-1)


if __name__ == "__main__":
    key = jax.random.PRNGKey(0)

    # Case 1: small aligned shapes -> single-pass fused path (grid_v == 1).
    batch, seq, d_model, vocab = 2, 8, 32, 128
    k_x, k_w, k_b, key = jax.random.split(key, 4)
    x = jax.random.normal(k_x, (batch, seq, d_model), dtype=jnp.float32)
    weight = jax.random.normal(k_w, (vocab, d_model), dtype=jnp.float32) / d_model ** 0.5
    bias = jax.random.normal(k_b, (vocab,), dtype=jnp.float32) * 0.01

    gen_f32 = PallasGenerator(weight, bias, out_dtype=jnp.float32)
    out = jax.block_until_ready(gen_f32(x))
    ref = _reference(x, weight, bias)
    assert out.shape == (batch, seq, vocab)
    assert jnp.allclose(out, ref, atol=2e-3, rtol=2e-3), "mismatch (case 1, f32 out)"

    # Default bf16 output path (halved writeback traffic).
    gen_bf16 = PallasGenerator(weight, bias)
    out_bf = jax.block_until_ready(gen_bf16(x)).astype(jnp.float32)
    assert jnp.allclose(out_bf, ref, atol=5e-2, rtol=5e-2), "mismatch (case 1, bf16 out)"

    # Case 2: unaligned shapes with forced small tiles -> multi-tile spill path
    # (exercises M/vocab padding, the logits spill and the subtract kernel).
    batch2, seq2, d_model2, vocab2 = 3, 7, 32, 300
    k_x2, k_w2, k_b2, key = jax.random.split(key, 4)
    x2 = jax.random.normal(k_x2, (batch2, seq2, d_model2), dtype=jnp.float32)
    weight2 = jax.random.normal(k_w2, (vocab2, d_model2), dtype=jnp.float32) / d_model2 ** 0.5
    bias2 = jax.random.normal(k_b2, (vocab2,), dtype=jnp.float32) * 0.01

    gen2 = PallasGenerator(weight2, bias2, out_dtype=jnp.float32,
                           tile_m=16, tile_v=128)
    out2 = jax.block_until_ready(gen2(x2))
    ref2 = _reference(x2, weight2, bias2)
    assert out2.shape == (batch2, seq2, vocab2)
    assert jnp.allclose(out2, ref2, atol=2e-3, rtol=2e-3), "mismatch (case 2, spill path)"

    print("KERNEL_OK")
</pallas_src>

<mosaic_0001>
module attributes {stable_mosaic.version = 11 : i64} {
  func.func @_fused_kernel(%arg0: i32, %arg1: memref<16x32xbf16, #tpu.memory_space<vmem>>, %arg2: memref<32x128xbf16, #tpu.memory_space<vmem>>, %arg3: memref<1x128xf32, #tpu.memory_space<vmem>>, %arg4: memref<16x128xf32, #tpu.memory_space<vmem>>) attributes {dimension_semantics = [#tpu.dimension_semantics<parallel>], iteration_bounds = array<i64: 1>, scalar_prefetch = 0 : i64, scratch_operands = 0 : i64, tpu.core_type = #tpu.core_type<tc>, window_params = [{transform_indices = @transform_0, window_bounds = array<i64: 16, 32>}, {pipeline_mode = #tpu.pipeline_mode<synchronous>, transform_indices = @transform_1, window_bounds = array<i64: 32, 128>}, {pipeline_mode = #tpu.pipeline_mode<synchronous>, transform_indices = @transform_2, window_bounds = array<i64: 1, 128>}, {transform_indices = @transform_3, window_bounds = array<i64: 16, 128>}]} {
    %c0 = arith.constant 0 : index
    %c0_0 = arith.constant 0 : index
    %0 = vector.load %arg1[%c0, %c0_0] : memref<16x32xbf16, #tpu.memory_space<vmem>>, vector<16x32xbf16>
    %c0_1 = arith.constant 0 : index
    %c0_2 = arith.constant 0 : index
    %1 = vector.load %arg2[%c0_1, %c0_2] : memref<32x128xbf16, #tpu.memory_space<vmem>>, vector<32x128xbf16>
    %cst = arith.constant dense<0.000000e+00> : vector<16x128xf32>
    %2 = tpu.matmul %0, %1, %cst {dimension_numbers = #tpu.dot_dimension_numbers<[1], [0], [0], [1], [0, 0, 1, 1], [], []>} : vector<16x32xbf16>, vector<32x128xbf16>, vector<16x128xf32> -> vector<16x128xf32>
    %c0_3 = arith.constant 0 : index
    %c0_4 = arith.constant 0 : index
    %3 = vector.load %arg3[%c0_3, %c0_4] : memref<1x128xf32, #tpu.memory_space<vmem>>, vector<1x128xf32>
    %4 = vector.broadcast %3 : vector<1x128xf32> to vector<16x128xf32>
    %5 = arith.addf %2, %4 : vector<16x128xf32>
    %cst_5 = arith.constant dense<0xFF800000> : vector<16xf32>
    %6 = vector.multi_reduction <maximumf>, %5, %cst_5 [1] : vector<16x128xf32> to vector<16xf32>
    %7 = vector.shape_cast %6 : vector<16xf32> to vector<16x1xf32>
    %8 = vector.broadcast %7 : vector<16x1xf32> to vector<16x128xf32>
    %9 = arith.subf %5, %8 : vector<16x128xf32>
    %10 = math.exp %9 : vector<16x128xf32>
    %cst_6 = arith.constant dense<0.000000e+00> : vector<16xf32>
    %11 = vector.multi_reduction <add>, %10, %cst_6 [1] : vector<16x128xf32> to vector<16xf32>
    %12 = vector.shape_cast %11 : vector<16xf32> to vector<16x1xf32>
    %13 = math.log %12 : vector<16x1xf32>
    %14 = arith.addf %7, %13 : vector<16x1xf32>
    %15 = vector.broadcast %14 : vector<16x1xf32> to vector<16x128xf32>
    %16 = arith.subf %5, %15 : vector<16x128xf32>
    %c0_7 = arith.constant 0 : index
    %c0_8 = arith.constant 0 : index
    %17 = vector.load %arg4[%c0_7, %c0_8] : memref<16x128xf32, #tpu.memory_space<vmem>>, vector<16x128xf32>
    tpu.vector_store %arg4[%c0_7, %c0_8], %16 {strides = array<i32>} : memref<16x128xf32, #tpu.memory_space<vmem>>, vector<16x128xf32>,
    return
  }
  func.func @transform_0(%arg0: i32) -> (i32, i32) {
    %c0_i32 = arith.constant 0 : i32
    %c0_i32_0 = arith.constant 0 : i32
    return %arg0, %c0_i32 : i32, i32
  }
  func.func @transform_1(%arg0: i32) -> (i32, i32) {
    %c0_i32 = arith.constant 0 : i32
    %c0_i32_0 = arith.constant 0 : i32
    %c0_i32_1 = arith.constant 0 : i32
    return %c0_i32, %c0_i32_0 : i32, i32
  }
  func.func @transform_2(%arg0: i32) -> (i32, i32) {
    %c0_i32 = arith.constant 0 : i32
    %c0_i32_0 = arith.constant 0 : i32
    %c0_i32_1 = arith.constant 0 : i32
    return %c0_i32, %c0_i32_0 : i32, i32
  }
  func.func @transform_3(%arg0: i32) -> (i32, i32) {
    %c0_i32 = arith.constant 0 : i32
    %c0_i32_0 = arith.constant 0 : i32
    return %arg0, %c0_i32 : i32, i32
  }
}

</mosaic_0001>

<bundles_post_ra>
// kernel: _forward_impl.1
= control target key start
LH: loop header
LB: loop body
LE: loop exit
PB: predicated region body
PF: predicated region fallthrough
CT: control target
= control target key end

     0   :  { %v187_v1 = vmov 0.0   ;;  %vm188_vm0 = vmmov 0   ;;  %s236_s0 = inlined_call_operand.vmem [shape: bf16[16,32], index: 0, kind: input, shape index: {}]   ;;  %s237_s1 = inlined_call_operand.vmem [shape: bf16[32,128], index: 1, kind: input, shape index: {}]   ;;  %s238_s2 = inlined_call_operand.vmem [shape: f32[1,128], index: 2, kind: input, shape index: {}]   ;;  %s239_s3 = inlined_call_operand.hbm [shape: f32[16,128], index: 3, kind: output, shape index: {}]  }
   0x1   :  { %v152_v0 = vld [vmem:[%s237_s1] sm:$0xff]   ;;  %139 = vmatprep.subr.bf16.mxu0 %v187_v1  ;;  %v153_v2 = vld [vmem:[%s237_s1 + $0x8] sm:$0xff]   ;;  %143 = vmatprep.mubr.msk.bf16.mxu0 %vm188_vm0, %v187_v1 }
   0x2   :  { %140 = vmatpush3.bf16.msra.mxu0 %v152_v0 }
   0x3   :  { %141 = vmatprep.subr.bf16.mxu0 %v187_v1 }
   0x4   :  { %8 = vsyncpa [#allocation3], 0  ;;  %v154_v3 = vld [vmem:[%s236_s0] sm:$0xff]   ;;  %vm46_vm1 = vcmask 261120   ;;  %s189_s0 = smov [#allocation2]  }
   0x5   :  { %v131_v4 = vld [vmem:[%s238_s2] ss:$0 sm:$0xff]  ;;  %s120_s1 = sshll.u32 %s189_s0, 4  ;;  %s121_s1 = int_to_ptr.vmem [resolvable:$true] %s120_s1 }
   0x6   :  { %142 = vmatpush3.bf16.msra.mxu0 %v153_v2  ;;  %s163_s2 = scalar_lea.vmem %s121_s1, 256  ;;  %p168_p1 = scmp.lt.s32.totalorder %s121_s1, %s121_s1 }
   0x7   :  { %p164_p0 = scmp.ne.s32.totalorder %s121_s1, %s163_s2  ;;  %p169_p2 = scmp.lt.s32.totalorder %s163_s2, %s163_s2 }
   0x9   :  { %144 = vmatmul.mubr.msk.bf16.vlgmr.msra.gmra.mrb[0].mxu0 %vm46_vm1, %v154_v3  ;;  %p170_p3 = por %p169_p2, %p168_p1 }
   0xb   :  { %p171_p4 = pnand %p170_p3, %p164_p0 }
  0xdc   :  { %v84_v5 = vpop.f32.mrb[0].mxu0 }
  0xdd   :  { %v85_v6 = vadd.f32 %v131_v4, %v84_v5  ;;  %v145_v7 = vpop.f32.mrb[1].mxu0 }
  0xde   :  { %v87_v8 = vpop.f32.mrb[2].mxu0 }
  0xdf   :  { %91 = vmax.xlane.f32.xlu0 %v85_v6  ;;  %v146_v9 = vpop.f32.mrb[3].mxu0  ;;  %v88_v10 = vadd.f32 %v131_v4, %v87_v8 }
  0xe3   :  { %93 = vmax.xlane.f32.xlu0 %v88_v10 }
 0x16c   :  { %v92_v11 = vpop.xlane.xlu0 %91 }
 0x16d   :  { %v95_v12 = vsub.f32 %v85_v6, %v92_v11 }
 0x16f   :  { %v97_v13 = vmul.f32 1.442695, %v95_v12 }
 0x170   :  { %v94_v14 = vpop.xlane.xlu0 %93 }
 0x171   :  { %v96_v15 = vsub.f32 %v88_v10, %v94_v14  ;;  %155 = vpow2.f32 %v97_v13 }
 0x173   :  { %v99_v16 = vmul.f32 1.442695, %v96_v15 }
 0x175   :  { %157 = vpow2.f32 %v99_v16 }
 0x17b   :  { %v156_v17 = vpop.eup %155 }
 0x17c   :  { %101 = vadd.xlane.f32.xlu1 %v156_v17 }
 0x17f   :  { %v158_v18 = vpop.eup %157 }
 0x180   :  { %103 = vadd.xlane.f32.xlu1 %v158_v18 }
 0x209   :  { %v102_v19 = vpop.xlane.xlu1 %101 }
 0x20a   :  { %159 = vlog2.f32 %v102_v19 }
 0x20d   :  { %v104_v20 = vpop.xlane.xlu1 %103 }
 0x20e   :  { %161 = vlog2.f32 %v104_v20 }
 0x214   :  { %v160_v21 = vpop.eup %159 }
 0x215   :  { %v106_v22 = vmul.f32 0.6931472, %v160_v21 }
 0x217   :  { %v109_v23 = vadd.f32 %v106_v22, %v92_v11 }
 0x218   :  { %v162_v24 = vpop.eup %161 }
 0x219   :  { %v111_v25 = vsub.f32 %v85_v6, %v109_v23  ;;  %v108_v26 = vmul.f32 0.6931472, %v162_v24 }
 0x21b   :  { %113 = vst [vmem:[#allocation2] sm:$0xff] %v111_v25  ;;  %v110_v27 = vadd.f32 %v108_v26, %v94_v14 }
 0x21d   :  { %v112_v28 = vsub.f32 %v88_v10, %v110_v27 }
 0x21f   :  { %114 = vst [vmem:[#allocation2 + $0x8] sm:$0xff] %v112_v28 }
 0x220   :  { %174 = shalt.err (!%p171_p4)
}
 0x221   :  { %s175_s22 = scalar_lea.hbm %s239_s3, 256 }
 0x222   :  { %p176_p5 = scmp.ne.s32.totalorder %s239_s3, %s175_s22  ;;  %p179_p6 = scmp.lt.u32.totalorder %s175_s22, %s239_s3 }
 0x224   :  { %p181_p7 = pnand %p179_p6, %p176_p5 }
 0x226   :  { %184 = shalt.err (!%p181_p7)
}
 0x227   :  { %s190_s27 = smov 128   ;;  %s191_s28 = smov 8  }
 0x228   :  { %126 = dma.vmem_to_hbm [thread:$0]  %s121_s1, 256, %s239_s3, [#allocation3], %s190_s27, %s190_s27, %s191_s28  }
 0x229   :  { %185 = dma.done.wait [#allocation3], 256  }
 0x22a   :  { %186 = vsyncadd [#allocation3], 4294967040 }
 0x22b   :  { %130 = vsyncpa [#allocation3], 1 }

</bundles_post_ra>
